<compile_context>
chip_gen: v7x
topology: tpu7x:2x2x1
jax: 0.10.0
libtpu: 0.0.40
codegen_flags: <defaults>
</compile_context>

<pallas_src>
import numpy as np
import jax
import jax.numpy as jnp
from jax.experimental import pallas as pl
from jax.experimental.pallas import tpu as pltpu

# Deterministic "parameters": the Sobel conv weights (2, 1, 3, 3) exactly as produced by
# get_sobel_xy_parameters(). Used by the pure-JAX reference check; the kernel uses the
# separable form of the same filters.
_SOBEL_X = np.array([[-1, 0, 1], [-2, 0, 2], [-1, 0, 1]], dtype=np.float32)
_SOBEL_Y = np.array([[-1, -2, -1], [0, 0, 0], [1, 2, 1]], dtype=np.float32)
SOBEL_W = np.stack([_SOBEL_X[None], _SOBEL_Y[None]], axis=0)  # (2, 1, 3, 3)

_RH = 8  # sublane-aligned height of the tiny halo blocks (min legal block height)


def _sobel_tile(x, top_row, bot_row):
    """Separable Sobel on one (TH, W) tile.

    x       : (TH, W) f32 tile rows
    top_row : (1, W)  f32 row directly above the tile (already zeroed at the image top)
    bot_row : (1, W)  f32 row directly below the tile (already zeroed at the image bottom)
    Returns (ix, iy), each (TH, W) f32.
    """
    TH, W = x.shape
    row = jax.lax.broadcasted_iota(jnp.int32, (TH, W), 0)
    col = jax.lax.broadcasted_iota(jnp.int32, (TH, W), 1)

    # Vertical neighbours via sublane roll + edge fix-up with the halo rows.
    x_up = jnp.where(row == 0, top_row, pltpu.roll(x, 1, 0))          # x[i-1, j]
    x_dn = jnp.where(row == TH - 1, bot_row, pltpu.roll(x, TH - 1, 0))  # x[i+1, j]

    s = x_up + 2.0 * x + x_dn   # vertical [1, 2, 1] smooth
    d = x_dn - x_up             # vertical [-1, 0, 1] diff

    # Horizontal +/-1 shifts via lane roll + zero mask at the image borders.
    s_l = jnp.where(col == 0, 0.0, pltpu.roll(s, 1, 1))          # s[i, j-1]
    s_r = jnp.where(col == W - 1, 0.0, pltpu.roll(s, W - 1, 1))  # s[i, j+1]
    d_l = jnp.where(col == 0, 0.0, pltpu.roll(d, 1, 1))          # d[i, j-1]
    d_r = jnp.where(col == W - 1, 0.0, pltpu.roll(d, W - 1, 1))  # d[i, j+1]

    ix = s_r - s_l                  # horizontal [-1, 0, 1] on s
    iy = d_l + 2.0 * d + d_r        # horizontal [1, 2, 1] on d
    return ix, iy


def _sobel_kernel_single(x_ref, o_ref):
    """nh == 1 fast path: the whole image height is one tile; zero halo top and bottom."""
    W = x_ref.shape[1]
    zrow = jnp.zeros((1, W), jnp.float32)
    ix, iy = _sobel_tile(x_ref[...], zrow, zrow)
    o_ref[0] = ix.astype(o_ref.dtype)
    o_ref[1] = iy.astype(o_ref.dtype)


def _sobel_kernel_halo(x_ref, top_ref, bot_ref, o_ref):
    """Multi-H-tile path: halo rows come from tiny neighbour blocks, masked at image edges.

    x_ref   : (TH, W)  tile rows
    top_ref : (RH, W)  block directly above the tile (last row = halo row)
    bot_ref : (RH, W)  block directly below the tile (first row = halo row)
    o_ref   : (2, TH, W)
    """
    RH = top_ref.shape[0]
    h = pl.program_id(1)
    is_first = h == 0
    is_last = h == pl.num_programs(1) - 1

    top_row = jnp.where(is_first, 0.0, top_ref[RH - 1:RH, :])
    bot_row = jnp.where(is_last, 0.0, bot_ref[0:1, :])

    ix, iy = _sobel_tile(x_ref[...], top_row, bot_row)
    o_ref[0] = ix.astype(o_ref.dtype)
    o_ref[1] = iy.astype(o_ref.dtype)


def _vmem_budget():
    """Per-generation (plane_cap_bytes, vmem_limit_bytes); conservative fallback if unknown."""
    try:
        vmem = pltpu.get_tpu_info().vmem_capacity_bytes
    except Exception:  # pragma: no cover - query not available; assume smallest (v7x per-TC)
        vmem = 64 * 1024 * 1024
    if vmem >= 96 * 1024 * 1024:
        # v5e / v6e: 128 MiB VMEM -> bigger tiles amortize per-step + halo overhead.
        return 6 * 1024 * 1024, 96 * 1024 * 1024
    # v7x: 64 MiB per TC -> keep tiles small, leave room for compiler temporaries.
    return 3 * 1024 * 1024, 40 * 1024 * 1024


def _height_tile(H, W, N, plane_cap_bytes):
    """Largest TH dividing H (multiple of 8, or == H) with a (TH, W) f32 plane <= cap.

    When N == 1, TH is additionally capped at H/2 so there are >= 2 parallel grid steps
    (both TensorCores busy on v7x)."""
    if H <= _RH or H % _RH != 0:
        return H  # single tile; halo path unused
    cap_rows = max(_RH, plane_cap_bytes // (4 * max(W, 1)))
    max_th = min(H, cap_rows)
    if N == 1:
        max_th = min(max_th, H // 2)
    max_th = max((max_th // _RH) * _RH, _RH)
    for th in range(max_th, _RH - 1, -_RH):
        if H % th == 0:
            return th
    return H


def image_gradients(x: jax.Array, *, th=None, out_dtype=jnp.float32) -> jax.Array:
    """Pallas equivalent of ImageGradientsLayer.forward. x: (N, 1, H, W) -> (N, 2, H, W)."""
    N, C, H, W = x.shape
    assert C == 1, "ImageGradientsLayer expects a single-channel image"
    x = x.astype(jnp.float32)

    plane_cap, vmem_limit = _vmem_budget()
    TH = _height_tile(H, W, N, plane_cap) if th is None else th
    assert H % TH == 0, "H must be divisible by the H-tile size"
    nh = H // TH

    if nh == 1:
        # Single H-tile: no halo blocks at all (no wasted halo HBM reads).
        grid = (N,)
        in_specs = [pl.BlockSpec((None, None, TH, W), lambda b: (b, 0, 0, 0))]
        out_specs = pl.BlockSpec((None, 2, TH, W), lambda b: (b, 0, 0, 0))
        kernel = _sobel_kernel_single
        args = (x,)
        dims = ("parallel",)
    else:
        assert TH % _RH == 0 and H % _RH == 0, \
            "multi-tile path requires TH and H to be multiples of 8"
        th_blocks = TH // _RH          # H-tile size measured in RH-row blocks
        last_blk = H // _RH - 1        # last valid RH-row block index
        grid = (N, nh)
        in_specs = [
            # the tile itself
            pl.BlockSpec((None, None, TH, W), lambda b, h: (b, 0, h, 0)),
            # RH-row block directly above the tile (clamped at the top edge, masked in-kernel)
            pl.BlockSpec((None, None, _RH, W),
                         lambda b, h: (b, 0, jnp.maximum(h * th_blocks - 1, 0), 0)),
            # RH-row block directly below the tile (clamped at the bottom edge, masked in-kernel)
            pl.BlockSpec((None, None, _RH, W),
                         lambda b, h: (b, 0, jnp.minimum((h + 1) * th_blocks, last_blk), 0)),
        ]
        out_specs = pl.BlockSpec((None, 2, TH, W), lambda b, h: (b, 0, h, 0))
        kernel = _sobel_kernel_halo
        args = (x, x, x)
        dims = ("parallel", "parallel")

    return pl.pallas_call(
        kernel,
        out_shape=jax.ShapeDtypeStruct((N, 2, H, W), out_dtype),
        grid=grid,
        in_specs=in_specs,
        out_specs=out_specs,
        compiler_params=pltpu.CompilerParams(
            dimension_semantics=dims,
            vmem_limit_bytes=vmem_limit,
        ),
    )(*args)


def _reference(x):
    """nn.Conv2d(1, 2, 3, bias=False, padding=1) with the Sobel weights, via XLA conv."""
    w = jnp.asarray(SOBEL_W)  # (O, I, Kh, Kw)
    return jax.lax.conv_general_dilated(
        x.astype(jnp.float32), w, window_strides=(1, 1), padding=((1, 1), (1, 1)),
        dimension_numbers=("NCHW", "OIHW", "NCHW"),
    )


if __name__ == "__main__":
    key = jax.random.PRNGKey(0)

    # Small shape consistent with the module: batch=2, single-channel 16x16 images.
    # (Single H-tile fast path, batch sharded across the parallel grid axis.)
    x = jax.random.normal(key, (2, 1, 16, 16), dtype=jnp.float32)
    out = jax.block_until_ready(image_gradients(x))
    assert out.shape == (2, 2, 16, 16), out.shape
    np.testing.assert_allclose(np.asarray(out), np.asarray(_reference(x)),
                               rtol=1e-5, atol=1e-5)

    # Multi-H-tile (halo) path: 32x128 image split into two 16-row tiles.
    x2 = jax.random.normal(jax.random.PRNGKey(0), (1, 1, 32, 128), dtype=jnp.float32)
    out2 = jax.block_until_ready(image_gradients(x2, th=16))
    np.testing.assert_allclose(np.asarray(out2), np.asarray(_reference(x2)),
                               rtol=1e-5, atol=1e-5)

    # Auto-tiling with batch=1: TH is capped at H/2 so nh>=2 (also exercises the halo path).
    x3 = jax.random.normal(jax.random.PRNGKey(0), (1, 1, 16, 16), dtype=jnp.float32)
    out3 = jax.block_until_ready(image_gradients(x3))
    np.testing.assert_allclose(np.asarray(out3), np.asarray(_reference(x3)),
                               rtol=1e-5, atol=1e-5)

    print("KERNEL_OK")
</pallas_src>

<mosaic_0001>
module attributes {stable_mosaic.version = 11 : i64} {
  func.func @_sobel_kernel_single(%arg0: i32, %arg1: memref<1x1x16x16xf32, #tpu.memory_space<vmem>>, %arg2: memref<1x2x16x16xf32, #tpu.memory_space<vmem>>) attributes {dimension_semantics = [#tpu.dimension_semantics<parallel>], iteration_bounds = array<i64: 2>, scalar_prefetch = 0 : i64, scratch_operands = 0 : i64, tpu.core_type = #tpu.core_type<tc>, window_params = [{transform_indices = @transform_0, window_bounds = array<i64: 1, 1, 16, 16>}, {transform_indices = @transform_1, window_bounds = array<i64: 1, 2, 16, 16>}]} {
    %cst = arith.constant 0.000000e+00 : f32
    %0 = vector.broadcast %cst : f32 to vector<1x16xf32>
    %c0 = arith.constant 0 : index
    %c0_0 = arith.constant 0 : index
    %c0_1 = arith.constant 0 : index
    %c0_2 = arith.constant 0 : index
    %1 = vector.load %arg1[%c0, %c0_0, %c0_1, %c0_2] : memref<1x1x16x16xf32, #tpu.memory_space<vmem>>, vector<1x1x16x16xf32>
    %2 = vector.shape_cast %1 : vector<1x1x16x16xf32> to vector<16x16xf32>
    %3 = tpu.iota {dimensions = array<i32: 0>} : vector<16x16xi32>
    %4 = tpu.iota {dimensions = array<i32: 1>} : vector<16x16xi32>
    %c0_i32 = arith.constant 0 : i32
    %5 = vector.broadcast %c0_i32 : i32 to vector<16x16xi32>
    %6 = arith.cmpi eq, %3, %5 : vector<16x16xi32>
    %c1_i32 = arith.constant 1 : i32
    %7 = tpu.dynamic_rotate %2 by %c1_i32 dim 0 : vector<16x16xf32>, i32 -> vector<16x16xf32>
    %8 = vector.shape_cast %0 : vector<1x16xf32> to vector<1x16xf32>
    %9 = vector.broadcast %8 : vector<1x16xf32> to vector<16x16xf32>
    %10 = arith.select %6, %9, %7 : vector<16x16xi1>, vector<16x16xf32>
    %c15_i32 = arith.constant 15 : i32
    %11 = vector.broadcast %c15_i32 : i32 to vector<16x16xi32>
    %12 = arith.cmpi eq, %3, %11 : vector<16x16xi32>
    %c15_i32_3 = arith.constant 15 : i32
    %13 = tpu.dynamic_rotate %2 by %c15_i32_3 dim 0 : vector<16x16xf32>, i32 -> vector<16x16xf32>
    %14 = vector.shape_cast %0 : vector<1x16xf32> to vector<1x16xf32>
    %15 = vector.broadcast %14 : vector<1x16xf32> to vector<16x16xf32>
    %16 = arith.select %12, %15, %13 : vector<16x16xi1>, vector<16x16xf32>
    %cst_4 = arith.constant 2.000000e+00 : f32
    %17 = vector.broadcast %cst_4 : f32 to vector<16x16xf32>
    %18 = arith.mulf %17, %2 : vector<16x16xf32>
    %19 = arith.addf %10, %18 : vector<16x16xf32>
    %20 = arith.addf %19, %16 : vector<16x16xf32>
    %21 = arith.subf %16, %10 : vector<16x16xf32>
    %c0_i32_5 = arith.constant 0 : i32
    %22 = vector.broadcast %c0_i32_5 : i32 to vector<16x16xi32>
    %23 = arith.cmpi eq, %4, %22 : vector<16x16xi32>
    %c1_i32_6 = arith.constant 1 : i32
    %24 = tpu.dynamic_rotate %20 by %c1_i32_6 dim 1 : vector<16x16xf32>, i32 -> vector<16x16xf32>
    %cst_7 = arith.constant 0.000000e+00 : f32
    %25 = vector.broadcast %cst_7 : f32 to vector<16x16xf32>
    %26 = arith.select %23, %25, %24 : vector<16x16xi1>, vector<16x16xf32>
    %c15_i32_8 = arith.constant 15 : i32
    %27 = vector.broadcast %c15_i32_8 : i32 to vector<16x16xi32>
    %28 = arith.cmpi eq, %4, %27 : vector<16x16xi32>
    %c15_i32_9 = arith.constant 15 : i32
    %29 = tpu.dynamic_rotate %20 by %c15_i32_9 dim 1 : vector<16x16xf32>, i32 -> vector<16x16xf32>
    %cst_10 = arith.constant 0.000000e+00 : f32
    %30 = vector.broadcast %cst_10 : f32 to vector<16x16xf32>
    %31 = arith.select %28, %30, %29 : vector<16x16xi1>, vector<16x16xf32>
    %c0_i32_11 = arith.constant 0 : i32
    %32 = vector.broadcast %c0_i32_11 : i32 to vector<16x16xi32>
    %33 = arith.cmpi eq, %4, %32 : vector<16x16xi32>
    %c1_i32_12 = arith.constant 1 : i32
    %34 = tpu.dynamic_rotate %21 by %c1_i32_12 dim 1 : vector<16x16xf32>, i32 -> vector<16x16xf32>
    %cst_13 = arith.constant 0.000000e+00 : f32
    %35 = vector.broadcast %cst_13 : f32 to vector<16x16xf32>
    %36 = arith.select %33, %35, %34 : vector<16x16xi1>, vector<16x16xf32>
    %c15_i32_14 = arith.constant 15 : i32
    %37 = vector.broadcast %c15_i32_14 : i32 to vector<16x16xi32>
    %38 = arith.cmpi eq, %4, %37 : vector<16x16xi32>
    %c15_i32_15 = arith.constant 15 : i32
    %39 = tpu.dynamic_rotate %21 by %c15_i32_15 dim 1 : vector<16x16xf32>, i32 -> vector<16x16xf32>
    %cst_16 = arith.constant 0.000000e+00 : f32
    %40 = vector.broadcast %cst_16 : f32 to vector<16x16xf32>
    %41 = arith.select %38, %40, %39 : vector<16x16xi1>, vector<16x16xf32>
    %42 = arith.subf %31, %26 : vector<16x16xf32>
    %cst_17 = arith.constant 2.000000e+00 : f32
    %43 = vector.broadcast %cst_17 : f32 to vector<16x16xf32>
    %44 = arith.mulf %43, %21 : vector<16x16xf32>
    %45 = arith.addf %36, %44 : vector<16x16xf32>
    %46 = arith.addf %45, %41 : vector<16x16xf32>
    %c0_18 = arith.constant 0 : index
    %c0_19 = arith.constant 0 : index
    %c0_20 = arith.constant 0 : index
    %c0_21 = arith.constant 0 : index
    %47 = vector.load %arg2[%c0_18, %c0_19, %c0_20, %c0_21] : memref<1x2x16x16xf32, #tpu.memory_space<vmem>>, vector<1x1x16x16xf32>
    %48 = vector.shape_cast %47 : vector<1x1x16x16xf32> to vector<16x16xf32>
    %49 = vector.shape_cast %42 : vector<16x16xf32> to vector<1x1x16x16xf32>
    tpu.vector_store %arg2[%c0_18, %c0_19, %c0_20, %c0_21], %49 {strides = array<i32>} : memref<1x2x16x16xf32, #tpu.memory_space<vmem>>, vector<1x1x16x16xf32>,
    %c0_22 = arith.constant 0 : index
    %c1 = arith.constant 1 : index
    %c0_23 = arith.constant 0 : index
    %c0_24 = arith.constant 0 : index
    %50 = vector.load %arg2[%c0_22, %c1, %c0_23, %c0_24] : memref<1x2x16x16xf32, #tpu.memory_space<vmem>>, vector<1x1x16x16xf32>
    %51 = vector.shape_cast %50 : vector<1x1x16x16xf32> to vector<16x16xf32>
    %52 = vector.shape_cast %46 : vector<16x16xf32> to vector<1x1x16x16xf32>
    tpu.vector_store %arg2[%c0_22, %c1, %c0_23, %c0_24], %52 {strides = array<i32>} : memref<1x2x16x16xf32, #tpu.memory_space<vmem>>, vector<1x1x16x16xf32>,
    return
  }
  func.func @transform_0(%arg0: i32) -> (i32, i32, i32, i32) {
    %c0_i32 = arith.constant 0 : i32
    %c0_i32_0 = arith.constant 0 : i32
    %c0_i32_1 = arith.constant 0 : i32
    %c0_i32_2 = arith.constant 0 : i32
    return %arg0, %c0_i32, %c0_i32_0, %c0_i32_1 : i32, i32, i32, i32
  }
  func.func @transform_1(%arg0: i32) -> (i32, i32, i32, i32) {
    %c0_i32 = arith.constant 0 : i32
    %c0_i32_0 = arith.constant 0 : i32
    %c0_i32_1 = arith.constant 0 : i32
    %c0_i32_2 = arith.constant 0 : i32
    return %arg0, %c0_i32, %c0_i32_0, %c0_i32_1 : i32, i32, i32, i32
  }
}

</mosaic_0001>

<bundles_post_ra>
// kernel: tpu_custom_call.1
= control target key start
LH: loop header
LB: loop body
LE: loop exit
PB: predicated region body
PF: predicated region fallthrough
CT: control target
= control target key end

     0   :  { %6 = vsyncpa [#allocation3], 0  ;;  %s705_s0 = inlined_call_operand.hbm [shape: f32[2,1,16,16], index: 0, kind: input, shape index: {}]   ;;  %s706_s1 = inlined_call_operand.hbm [shape: f32[2,2,16,16], index: 1, kind: output, shape index: {}]  }
   0x1   :  { %8 = vsyncpa [#allocation3 + $0x1], 0 }
   0x2   :  { %9 = vsyncpa [#allocation4], 0 }
   0x3   :  { %11 = vsyncpa [#allocation4 + $0x1], 0  ;;  %s520_s6 = smov 0   ;;  %s522_s7 = smov 0  }
   0x4   :  { %s524_s8 = smov 0   ;;  %s526_s9 = smov 0  }
   0x5 LB: > { %s541_s10 = sadd.s32 4294967295, %s499_s9   ;;  %s332_s11 = sadd.s32 4294967294, %s499_s9   ;;  %s499_s9 = sphi %s526_s9, %s719_s9   ;;  %s495_s8 = sphi %s524_s8, %s718_s8   ;;  %s491_s7 = sphi %s522_s7, %s717_s7   ;;  %s487_s6 = sphi %s520_s6, %s716_s6  }
   0x6   : > { %s545_s12 = sadd.s32 1, %s499_s9   ;;  %s24_s13 = sadd.s32 1, %s495_s8 }
   0x7   : > { %s21_s14 = ssub.s32 %s499_s9, %s545_s12  ;;  %p31_p0 = scmp.ne.s32.totalorder %s495_s8, %s491_s7 }
   0x8   : > { %p22_p1 = scmp.eq.s32.totalorder %s21_s14, 0  ;;  %p32_p2 = scmp.eq.s32.totalorder %s499_s9, 0 }
   0x9   : > { %p37_p3 = scmp.ne.s32.totalorder %s491_s7, %s487_s6  ;;  %p38_p4 = scmp.eq.s32.totalorder %s541_s10, 0 }
   0xa   : > { %s557_s15 = scalar_select %p22_p1, %s495_s8, %s24_s13  }
   0xb   : > { %p559_p5 = por %p32_p2, %p31_p0  ;;  %p563_p6 = por %p38_p4, %p37_p3 }
   0xc   : > { %p61_p7 = scmp.eq.s32.totalorder %s541_s10, 1  ;;  %p67_p8 = scmp.eq.s32.totalorder %s332_s11, 1 }
   0xd   : > { %p362_p10 = scmp.lt.s32.totalorder %s499_s9, 2  ;;  %s87_s20 = sand.u32 1, %s495_s8  }
   0xe   : > { %p570_p11 = por %p61_p7, %p31_p0  ;;  %p574_p12 = por %p67_p8, %p37_p3 }
   0xf   : > { %s348_s21 = sshll.u32 %s499_s9, 8  ;;  %s335_s22 = sshll.u32 %s87_s20, 4 }
  0x10   : > { %s710_s18 = scalar_select %p570_p11, 1, 0 }
  0x11   : > { %s711_s19 = scalar_select %p574_p12, 1, 0 }
  0x12   : > { %s583_s25 = scalar_lea.hbm %s705_s0, %s348_s21  ;;  %s91_s26 = scalar_lea.vmem [#allocation2], %s335_s22 }
  0x13   : > { %s98_s27 = sshll.u32 %s91_s26, 4  ;;  %p587_p13 = pnand %p362_p10, %p559_p5  ;;  %s591_s27 = int_to_ptr.vmem [resolvable:$true] %s98_s27 }
  0x14   : > { %s593_s29 = scalar_lea.sflag [#allocation3], %s87_s20  ;;  %s403_s30 = scalar_lea.hbm %s583_s25, 256 }
  0x15   : > { %p404_p0 = scmp.ne.s32.totalorder %s583_s25, %s403_s30  ;;  %p405_p1 = pneg %p587_p13 }
  0x16   : > { %s408_s4 = scalar_lea.hbm %s705_s0, 512  ;;  %p409_p4 = scmp.lt.u32.totalorder %s583_s25, %s705_s0 }
  0x17   : > { %p406_p2 = pnand %p405_p1, %p404_p0  ;;  %p410_p5 = scmp.lt.u32.totalorder %s408_s4, %s403_s30 }
  0x18   : > { %p412_p8 = scmp.lt.u32.totalorder %s403_s30, %s583_s25 }
  0x19   : > { %p407_p3 = pneg %p406_p2  ;;  %p411_p7 = por %p410_p5, %p409_p4 }
  0x1b   : > { %p413_p10 = por %p412_p8, %p411_p7 }
  0x1d   : > { %p414_p9 = pnand %p413_p10, %p407_p3 }
  0x1f   : > { %417 = shalt.err (!%p414_p9)
}
  0x20   : > { %s418_s13 = scalar_lea.vmem %s591_s27, 256  ;;  %s501_s14 = smov [#allocation2]  }
  0x21   : > { %p419_p0 = scmp.ne.s32.totalorder %s591_s27, %s418_s13  ;;  %s423_s16 = sshll.u32 %s501_s14, 4  ;;  %s424_s16 = int_to_ptr.vmem [resolvable:$false] %s423_s16 }
  0x22   : > { %s425_s20 = scalar_lea.vmem %s424_s16, 512  ;;  %p426_p11 = scmp.lt.s32.totalorder %s591_s27, %s424_s16 }
  0x23   : > { %p421_p2 = pnand %p419_p0, %p405_p1  ;;  %p427_p4 = scmp.lt.s32.totalorder %s425_s20, %s418_s13 }
  0x25   : > { %p422_p12 = pneg %p421_p2  ;;  %p428_p5 = por %p427_p4, %p426_p11 }
  0x27   : > { %p429_p7 = pnand %p428_p5, %p422_p12 }
  0x29   : > { %432 = shalt.err (!%p429_p7)
}
  0x2a   : > { %s502_s21 = smov 128   ;;  %s503_s22 = smov 8  }
  0x2b   : > { %357 = dma.hbm_to_vmem [thread:$0]  (!%p587_p13), %s583_s25, 256, %s591_s27, %s593_s29, %s502_s21, %s502_s21, %s503_s22  }
  0x2c   : > { %p338_p9 = scmp.ge.s32.totalorder %s499_s9, 1  ;;  %p106_p1 = scmp.lt.s32.totalorder %s499_s9, 3 }
  0x2e   : > { %p107_p3 = pnand %p338_p9, %p106_p1 }
  0x2f   : > { %s624_s23 = sand.u32 (!%p107_p3), 1, %s491_s7  }
  0x30   : > { %110 = sbr.rel (%p107_p3) target bundleno = 446 (0x1be), region = 24  ;;  %s339_s24 = sshll.u32 (!%p107_p3), %s624_s23, 4 }
  0x31   : > { %s113_s26 = scalar_lea.sflag (!%p107_p3), [#allocation3], %s624_s23  ;;  %s116_s30 = scalar_lea.vmem (!%p107_p3), [#allocation2], %s339_s24 }
  0x37   : > { %478 = dma.done.wait (%p563_p6), %s113_s26, 256  }
  0x38   : > { %480 = vsyncadd (%p563_p6), %s113_s26, 4294967040  ;;  %v137_v0 = vlaneseq  ;;  %v135_v3 = vld [vmem:[%s116_s30] sm:$0xff]  ;;  %v136_v4 = vld [vmem:[%s116_s30 + $0x8] sm:$0xff]  ;;  %s504_s17 = smov 16   ;;  %vm169_vm4 = vcmask 1047680   ;;  %s505_s25 = smov 113  }
  0x39   : > { %v144_v5 = vrot.slane %v135_v3, 7  ;;  %v145_v6 = vrot.slane %v136_v4, 7  ;;  %v153_v7 = vrot.slane %v135_v3, 1  ;;  %v154_v8 = vrot.slane %v136_v4, 1  ;;  %s506_s27 = smov 127   ;;  %s340_s28 = sshll.u32 %s624_s23, 5 }
  0x3a   : > { %v138_v1 = vshrl.u32 %v137_v0, 7  ;;  %v160_v9 = vmul.f32 2.0, %v135_v3  ;;  %v161_v10 = vmul.f32 2.0, %v136_v4  ;;  %v141_v40 = vand.u32 127, %v137_v0  ;;  %s134_s29 = scalar_lea.vmem [#allocation5], %s340_s28  ;;  %s349_s3 = sshll.u32 %s541_s10, 9 }
  0x3b   : > { %vm239_vm7 = vcmask 130048   ;;  %s259_s2 = sshll.u32 %s134_s29, 4  ;;  %s660_s11 = scalar_lea.hbm %s706_s1, %s349_s3  ;;  %s652_s2 = int_to_ptr.vmem [resolvable:$true] %s259_s2 }
  0x3c   : > { %v139_v2 = vadd.s32 8, %v138_v1  ;;  %vm142_vm0 = vcmp.eq.s32.totalorder %v138_v1, 0  ;;  %vm146_vm1 = vcmp.lt.s32.totalorder %v138_v1, 1  ;;  %vm155_vm2 = vcmp.lt.s32.totalorder %v138_v1, 7  ;;  %s246_s10 = scalar_lea.sflag [#allocation4], %s624_s23  ;;  %s433_s13 = scalar_lea.vmem %s652_s2, 512 }
  0x3d   : > { %v148_v11 = vsel %vm146_vm1, %v145_v6, %v144_v5  ;;  %v156_v12 = vsel %vm155_vm2, %v153_v7, %v154_v8  ;;  %v157_v13 = vsel %vm155_vm2, %v154_v8, %v153_v7  ;;  %v147_v15 = vsel %vm146_vm1, %v144_v5, %v145_v6  ;;  %p434_p6 = scmp.ne.s32.totalorder %s652_s2, %s433_s13  ;;  %p713_p11 = scmp.ne.s32.totalorder %s710_s18, 0 }
  0x3e   : > { %vm152_vm3 = vcmp.eq.s32.totalorder %v139_v2, 15  ;;  %v149_v14 = vsel %vm142_vm0, 0.0, %v148_v11  ;;  %v163_v19 = vadd.f32 %v161_v10, %v147_v15  ;;  %vm168_vm5 = vcmp.eq.s32.totalorder %v141_v40, 0  ;;  %s507_s14 = smov [#allocation5]  }
  0x3f   : > { %v159_v16 = vsel %vm152_vm3, 0.0, %v157_v13  ;;  %v166_v17 = vsub.f32 %v156_v12, %v149_v14  ;;  %v162_v18 = vadd.f32 %v160_v9, %v149_v14  ;;  %vm192_vm6 = vcmp.eq.s32.totalorder %v141_v40, 15  ;;  %p435_p12 = pnand %p434_p6, %p713_p11  ;;  %s437_s16 = sshll.u32 %s507_s14, 4  ;;  %s438_s16 = int_to_ptr.vmem [resolvable:$false] %s437_s16 }
  0x40   : > { %v167_v21 = vsub.f32 %v159_v16, %v147_v15  ;;  %v165_v22 = vadd.f32 %v163_v19, %v159_v16  ;;  %s439_s20 = scalar_lea.vmem %s438_s16, 1024  ;;  %p440_p8 = scmp.lt.s32.totalorder %s652_s2, %s438_s16 }
  0x41   : > { %201 = vrot.lane.b32.xlu0 %v166_v17, %s504_s17  ;;  %v164_v20 = vadd.f32 %v162_v18, %v156_v12  ;;  %v233_v43 = vmul.f32 2.0, %v166_v17  ;;  %p436_p13 = pneg %p435_p12  ;;  %p441_p10 = scmp.lt.s32.totalorder %s439_s20, %s433_s13 }
  0x42   : > { %v234_v51 = vmul.f32 2.0, %v167_v21 }
  0x43   : > { %170 = vrot.lane.b32.xlu1 %v164_v20, %s504_s17  ;;  %p442_p0 = por %p441_p10, %p440_p8 }
  0x45   : > { %204 = vrot.lane.b32.xlu0 %v167_v21, %s504_s17  ;;  %p443_p2 = pnand %p442_p0, %p436_p13 }
  0x47   : > { %173 = vrot.lane.b32.xlu1 %v165_v22, %s504_s17 }
  0xb3   : > { %v202_v23 = vpop.permute.xlu0 %201 }
  0xb4   : > { %v203_v24 = vsel %vm169_vm4, %v202_v23, %v166_v17 }
  0xb5   : > { %207 = vrot.lane.b32.xlu0 %v203_v24, %s504_s17  ;;  %v171_v25 = vpop.permute.xlu1 %170 }
  0xb6   : > { %v172_v26 = vsel %vm169_vm4, %v171_v25, %v164_v20 }
  0xb7   : > { %v205_v27 = vpop.permute.xlu0 %204 }
  0xb8   : > { %v206_v28 = vsel %vm169_vm4, %v205_v27, %v167_v21 }
  0xb9   : > { %176 = vrot.lane.b32.xlu0 %v172_v26, %s504_s17  ;;  %209 = vrot.lane.b32.xlu1 %v206_v28, %s504_s17  ;;  %v174_v29 = vpop.permute.xlu1 %173 }
  0xba   : > { %v175_v30 = vsel %vm169_vm4, %v174_v29, %v165_v22 }
  0xbd   : > { %178 = vrot.lane.b32.xlu1 %v175_v30, %s504_s17 }
 0x127   : > { %v208_v31 = vpop.permute.xlu0 %207 }
 0x128   : > { %v211_v32 = vsel %vm169_vm4, %v208_v31, %v166_v17 }
 0x129   : > { %215 = vrot.lane.b32.xlu0 %v211_v32, %s505_s25 }
 0x12b   : > { %v177_v33 = vpop.permute.xlu0 %176  ;;  %v210_v34 = vpop.permute.xlu1 %209 }
 0x12c   : > { %v180_v35 = vsel %vm169_vm4, %v177_v33, %v164_v20  ;;  %v212_v36 = vsel %vm169_vm4, %v210_v34, %v167_v21 }
 0x12d   : > { %184 = vrot.lane.b32.xlu0 %v180_v35, %s505_s25  ;;  %217 = vrot.lane.b32.xlu1 %v212_v36, %s505_s25 }
 0x12f   : > { %v179_v37 = vpop.permute.xlu1 %178 }
 0x130   : > { %v181_v38 = vsel %vm169_vm4, %v179_v37, %v165_v22 }
 0x131   : > { %193 = vrot.lane.b32.xlu0 %v180_v35, %s506_s27  ;;  %186 = vrot.lane.b32.xlu1 %v181_v38, %s505_s25 }
 0x135   : > { %223 = vrot.lane.b32.xlu0 %v211_v32, %s506_s27  ;;  %195 = vrot.lane.b32.xlu1 %v181_v38, %s506_s27 }
 0x139   : > { %225 = vrot.lane.b32.xlu1 %v212_v36, %s506_s27 }
 0x19b   : > { %v216_v39 = vpop.permute.xlu0 %215 }
 0x19c   : > { %v221_v46 = vsel %vm168_vm5, 0.0, %v216_v39 }
 0x19d   : > { %v235_v50 = vadd.f32 %v233_v43, %v221_v46 }
 0x19f   : > { %v185_v41 = vpop.permute.xlu0 %184  ;;  %v218_v42 = vpop.permute.xlu1 %217 }
 0x1a0   : > { %v190_v47 = vsel %vm168_vm5, 0.0, %v185_v41  ;;  %v222_v54 = vsel %vm168_vm5, 0.0, %v218_v42 }
 0x1a1   : > { %v236_v60 = vadd.f32 %v234_v51, %v222_v54 }
 0x1a3   : > { %v194_v44 = vpop.permute.xlu0 %193  ;;  %v187_v45 = vpop.permute.xlu1 %186 }
 0x1a4   : > { %v199_v48 = vsel %vm192_vm6, 0.0, %v194_v44  ;;  %v191_v55 = vsel %vm168_vm5, 0.0, %v187_v45 }
 0x1a5   : > { %v231_v49 = vsub.f32 %v199_v48, %v190_v47 }
 0x1a7   : > { %240 = vst.msk [vmem:[%s134_s29] sm:$0xff] %vm239_vm7, %v231_v49  ;;  %v224_v52 = vpop.permute.xlu0 %223  ;;  %v196_v53 = vpop.permute.xlu1 %195 }
 0x1a8   : > { %v229_v56 = vsel %vm192_vm6, 0.0, %v224_v52  ;;  %v200_v57 = vsel %vm192_vm6, 0.0, %v196_v53 }
 0x1a9   : > { %v237_v58 = vadd.f32 %v235_v50, %v229_v56  ;;  %v232_v59 = vsub.f32 %v200_v57, %v191_v55 }
 0x1ab   : > { %341 = vst.msk [vmem:[%s134_s29 + $0x10] sm:$0xff] %vm239_vm7, %v237_v58  ;;  %241 = vst.msk [vmem:[%s134_s29 + $0x8] sm:$0xff] %vm239_vm7, %v232_v59  ;;  %v226_v61 = vpop.permute.xlu1 %225 }
 0x1ac   : > { %v230_v62 = vsel %vm192_vm6, 0.0, %v226_v61 }
 0x1ad   : > { %v238_v63 = vadd.f32 %v236_v60, %v230_v62 }
 0x1af   : > { %342 = vst.msk [vmem:[%s134_s29 + $0x18] sm:$0xff] %vm239_vm7, %v238_v63 }
 0x1b0   : > { %446 = shalt.err (!%p443_p2)
}
 0x1b1   : > { %s447_s21 = scalar_lea.hbm %s660_s11, 512  ;;  %s451_s26 = scalar_lea.hbm %s706_s1, 1024 }
 0x1b2   : > { %p448_p4 = scmp.ne.s32.totalorder %s660_s11, %s447_s21  ;;  %p452_p9 = scmp.lt.u32.totalorder %s660_s11, %s706_s1 }
 0x1b3   : > { %p453_p1 = scmp.lt.u32.totalorder %s451_s26, %s447_s21  ;;  %p455_p6 = scmp.lt.u32.totalorder %s447_s21, %s660_s11 }
 0x1b4   : > { %p449_p5 = pnand %p448_p4, %p713_p11 }
 0x1b5   : > { %p454_p3 = por %p453_p1, %p452_p9 }
 0x1b6   : > { %p450_p7 = pneg %p449_p5 }
 0x1b7   : > { %p456_p12 = por %p455_p6, %p454_p3 }
 0x1b9   : > { %p457_p13 = pnand %p456_p12, %p450_p7 }
 0x1bb   : > { %460 = shalt.err (!%p457_p13)
}
 0x1bc   : > { %s508_s25 = smov 128   ;;  %s509_s27 = smov 8  }
 0x1bd   : > { %352 = dma.vmem_to_hbm [thread:$0]  (%p713_p11), %s652_s2, 512, %s660_s11, %s246_s10, %s508_s25, %s508_s25, %s509_s27  }
 0x1be PF: > { %s274_s28 = sand.u32 1, %s487_s6   ;;  %p714_p8 = scmp.ne.s32.totalorder %s711_s19, 0 }
 0x1bf   : > { %p715_p10 = scmp.ge.s32.totalorder %s499_s9, 2  ;;  %s275_s29 = scalar_lea.sflag [#allocation4], %s274_s28 }
 0x1c1   : > { %p359_p0 = pnand %p715_p10, %p714_p8 }
 0x1c3   : > { %482 = dma.done.wait (!%p359_p0), %s275_s29, 512  }
 0x1c4   : > { %484 = vsyncadd (!%p359_p0), %s275_s29, 4294966784  ;;  %p14_p2 = scmp.ge.s32.totalorder %s545_s12, 4   ;;  %s716_s6 = smov %s491_s7 }
 0x1c5   : > { %s717_s7 = smov %s495_s8  ;;  %s718_s8 = smov %s557_s15 }
 0x1c6   : > { %s719_s9 = smov %s545_s12  ;;  %16 = sbr.rel (!%p14_p2) target bundleno = 5 (0x5), region = 70 }
 0x1cd   :  { %280 = vsyncpa [#allocation3], 1 }
 0x1ce   :  { %282 = vsyncpa [#allocation3 + $0x1], 1 }
 0x1cf   :  { %283 = vsyncpa [#allocation4], 1 }
 0x1d0   :  { %285 = vsyncpa [#allocation4 + $0x1], 1 }

</bundles_post_ra>
